<compile_context>
chip_gen: v6e
topology: v6e:2x2x1
jax: 0.10.0
libtpu: 0.0.40
codegen_flags: <defaults>
</compile_context>

<pallas_src>
import jax
import jax.numpy as jnp
from jax.experimental import pallas as pl
from jax.experimental.pallas import tpu as pltpu


def one_minus_kernel(x_ref, o_ref):
    # Pure VPU elementwise: 1 - x over the whole VMEM tile, in the native dtype.
    x = x_ref[...]
    o_ref[...] = (jnp.ones((), dtype=o_ref.dtype) - x).astype(o_ref.dtype)


def _sublane_multiple(dtype) -> int:
    # f32 -> 8, bf16/f16 -> 16, int8/fp8 -> 32 (sub-32-bit dtypes pack along sublanes).
    itemsize = jnp.dtype(dtype).itemsize
    return 8 * max(1, 4 // max(1, itemsize))


def one_minus(x1, x2=None):
    # x2 is unused (module semantics: return 1 - x1).
    orig_shape = x1.shape
    orig_dtype = x1.dtype
    n = x1.size

    if n == 0:
        return x1

    sublane = _sublane_multiple(orig_dtype)
    itemsize = jnp.dtype(orig_dtype).itemsize

    # --- Lane-width selection (sublane-aware first pass, plain divisor fallback) ---
    lane = None
    for cand in (2048, 1024, 512, 256, 128):
        if n % (cand * sublane) == 0:  # rows = n // cand is a multiple of `sublane`
            lane = cand
            break
    if lane is None:
        for cand in (2048, 1024, 512, 256, 128):
            if n % cand == 0:
                lane = cand
                break
    if lane is None:
        # Ragged size: avoid the pad + slice HBM round trips entirely; this op is
        # pure bandwidth so fused XLA 1 - x1 is the right tool here.
        return jnp.ones((), dtype=orig_dtype) - x1

    rows = n // lane
    x2d = x1.reshape(rows, lane)

    # --- Tile sizing (generation-aware) ---
    try:
        kind = jax.devices()[0].device_kind.lower()
    except Exception:
        kind = ""
    is_v7 = "v7" in kind
    target_tile_bytes = (8 if is_v7 else 4) * 1024 * 1024

    tile_rows = max(1, min(rows, target_tile_bytes // (lane * itemsize)))

    # v7x: two TensorCores per chip — make sure the parallel axis has >= 2 steps
    # whenever we can do so without breaking the sublane constraint.
    if is_v7 and tile_rows >= rows and rows >= 2 * sublane:
        tile_rows = pl.cdiv(rows, 2)

    if tile_rows < rows:
        # Respect the (sublane, 128) tiling when not taking the full dim.
        tile_rows = max(sublane, (tile_rows // sublane) * sublane)
        tile_rows = min(rows, tile_rows)  # guard (cannot trigger at default sizes)

    grid = (pl.cdiv(rows, tile_rows),)

    out2d = pl.pallas_call(
        one_minus_kernel,
        out_shape=jax.ShapeDtypeStruct((rows, lane), orig_dtype),
        grid_spec=pltpu.PrefetchScalarGridSpec(
            num_scalar_prefetch=0,
            grid=grid,
            in_specs=[pl.BlockSpec((tile_rows, lane), lambda i: (i, 0))],
            out_specs=pl.BlockSpec((tile_rows, lane), lambda i: (i, 0)),
        ),
        compiler_params=pltpu.CompilerParams(
            dimension_semantics=("parallel",),
            # 2 buffers x (in + out) x <=8 MiB = <=32 MiB; keep headroom under 48 MiB
            # (v7x VMEM is only 64 MiB per TC).
            vmem_limit_bytes=48 * 1024 * 1024,
        ),
    )(x2d)

    return out2d.reshape(orig_shape)


if __name__ == "__main__":
    key = jax.random.PRNGKey(0)
    k1, k2 = jax.random.split(key)
    # Small NCHW-style inputs consistent with an elementwise op.
    x1 = jax.random.normal(k1, (2, 4, 16, 16), dtype=jnp.float32)
    x2 = jax.random.normal(k2, (2, 4, 16, 16), dtype=jnp.float32)  # ignored, like PyTorch

    out = one_minus(x1, x2)
    out = jax.block_until_ready(out)

    ref = 1.0 - x1
    assert out.shape == x1.shape
    assert jnp.allclose(out, ref, atol=1e-6), "mismatch vs reference"
    print("KERNEL_OK")
</pallas_src>

<mosaic_0001>
module attributes {stable_mosaic.version = 11 : i64} {
  func.func @one_minus_kernel(%arg0: i32, %arg1: memref<8x256xf32, #tpu.memory_space<vmem>>, %arg2: memref<8x256xf32, #tpu.memory_space<vmem>>) attributes {dimension_semantics = [#tpu.dimension_semantics<parallel>], iteration_bounds = array<i64: 1>, scalar_prefetch = 0 : i64, scratch_operands = 0 : i64, tpu.core_type = #tpu.core_type<tc>, window_params = [{transform_indices = @transform_0, window_bounds = array<i64: 8, 256>}, {transform_indices = @transform_1, window_bounds = array<i64: 8, 256>}]} {
    %c0 = arith.constant 0 : index
    %c0_0 = arith.constant 0 : index
    %0 = vector.load %arg1[%c0, %c0_0] : memref<8x256xf32, #tpu.memory_space<vmem>>, vector<8x256xf32>
    %cst = arith.constant 1.000000e+00 : f32
    %1 = vector.broadcast %cst : f32 to vector<8x256xf32>
    %2 = arith.subf %1, %0 : vector<8x256xf32>
    %c0_1 = arith.constant 0 : index
    %c0_2 = arith.constant 0 : index
    %3 = vector.load %arg2[%c0_1, %c0_2] : memref<8x256xf32, #tpu.memory_space<vmem>>, vector<8x256xf32>
    tpu.vector_store %arg2[%c0_1, %c0_2], %2 {strides = array<i32>} : memref<8x256xf32, #tpu.memory_space<vmem>>, vector<8x256xf32>,
    return
  }
  func.func @transform_0(%arg0: i32) -> (i32, i32) {
    %c0_i32 = arith.constant 0 : i32
    %c0_i32_0 = arith.constant 0 : i32
    return %arg0, %c0_i32 : i32, i32
  }
  func.func @transform_1(%arg0: i32) -> (i32, i32) {
    %c0_i32 = arith.constant 0 : i32
    %c0_i32_0 = arith.constant 0 : i32
    return %arg0, %c0_i32 : i32, i32
  }
}

</mosaic_0001>

<bundles_post_ra>
// kernel: tpu_custom_call.1
= control target key start
LH: loop header
LB: loop body
LE: loop exit
PB: predicated region body
PF: predicated region fallthrough
CT: control target
= control target key end

     0   :  { %6 = vsyncpa [#allocation3], 0  ;;  %s106_s0 = inlined_call_operand.hbm [shape: f32[8,256], index: 0, kind: input, shape index: {}]   ;;  %s107_s1 = inlined_call_operand.hbm [shape: f32[8,256], index: 1, kind: output, shape index: {}]  }
   0x1   :  { %7 = vsyncpa [#allocation4], 0  ;;  %s88_s6 = smov [#allocation2]  }
   0x2   :  { %s14_s7 = sshll.u32 %s88_s6, 4  ;;  %s15_s7 = int_to_ptr.vmem [resolvable:$true] %s14_s7 }
   0x3   :  { %s52_s8 = scalar_lea.vmem %s15_s7, 256  ;;  %p57_p1 = scmp.lt.s32.totalorder %s15_s7, %s15_s7 }
   0x4   :  { %p53_p0 = scmp.ne.s32.totalorder %s15_s7, %s52_s8  ;;  %p58_p2 = scmp.lt.s32.totalorder %s52_s8, %s52_s8 }
   0x6   :  { %p59_p3 = por %p58_p2, %p57_p1 }
   0x8   :  { %p60_p4 = pnand %p59_p3, %p53_p0 }
   0xa   :  { %63 = shalt.err (!%p60_p4)
}
   0xb   :  { %17 = dma.hbm_to_vmem [thread:$0]  %s106_s0, 256, %s15_s7, [#allocation3]  }
   0xc   :  { %84 = dma.done.wait [#allocation3], 256  }
   0xd   :  { %85 = vsyncadd [#allocation3], 4294967040  ;;  %s89_s11 = smov [#allocation5]   ;;  %v21_v0 = vld [vmem:[#allocation2] sm:$0xff]  ;;  %v22_v1 = vld [vmem:[#allocation2 + $0x8] sm:$0xff] }
   0xe   :  { %s33_s12 = sshll.u32 %s89_s11, 4  ;;  %v23_v2 = vsub.f32 1.0, %v21_v0  ;;  %v24_v3 = vsub.f32 1.0, %v22_v1  ;;  %s34_s12 = int_to_ptr.vmem [resolvable:$true] %s33_s12 }
   0xf   :  { %s64_s13 = scalar_lea.vmem %s34_s12, 256  ;;  %p69_p6 = scmp.lt.s32.totalorder %s34_s12, %s34_s12 }
  0x10   :  { %25 = vst [vmem:[#allocation5] sm:$0xff] %v23_v2  ;;  %26 = vst [vmem:[#allocation5 + $0x8] sm:$0xff] %v24_v3  ;;  %p65_p5 = scmp.ne.s32.totalorder %s34_s12, %s64_s13  ;;  %p70_p7 = scmp.lt.s32.totalorder %s64_s13, %s64_s13 }
  0x12   :  { %p71_p8 = por %p70_p7, %p69_p6 }
  0x14   :  { %p72_p9 = pnand %p71_p8, %p65_p5 }
  0x16   :  { %75 = shalt.err (!%p72_p9)
}
  0x17   :  { %36 = dma.vmem_to_hbm [thread:$0]  %s34_s12, 256, %s107_s1, [#allocation4]  }
  0x18   :  { %86 = dma.done.wait [#allocation4], 256  }
  0x19   :  { %87 = vsyncadd [#allocation4], 4294967040 }
  0x1a   :  { %40 = vsyncpa [#allocation3], 1 }
  0x1b   :  { %41 = vsyncpa [#allocation4], 1 }

</bundles_post_ra>
